<compile_context>
chip_gen: v5e
topology: v5e:2x2
jax: 0.10.0
libtpu: 0.0.40
codegen_flags: <defaults>
</compile_context>

<pallas_src>
import numpy as np
import jax
import jax.numpy as jnp
from jax.experimental import pallas as pl
from jax.experimental.pallas import tpu as pltpu

BIG_PRIME = 17461204521323          # big_prime_number from the reference
MASK64 = (1 << 64) - 1
GATHER_VOCAB_THRESHOLD = 2048       # one-hot MXU gather below, DMA row gather above


def _round_up(n, m):
    return ((n + m - 1) // m) * m


def _pick_tile(n, unit, cap, floor):
    """Tile size along one axis: a multiple of `unit`, at most `cap`.
    Prefers an exact divisor of the unit-padded extent (>= floor) to avoid pad
    waste; otherwise pads up to a cap multiple so blocks stay large."""
    n_u = _round_up(n, unit)
    if n_u <= cap:
        return n_u, n_u
    for t in range(cap, floor - 1, -unit):
        if n_u % t == 0:
            return t, n_u
    return cap, _round_up(n_u, cap)


class GridPartitioner:
    """Minimal synthetic partitioner: num_vars variables, `partitions` fuzzy sets
    spanning [min, max] with triangular membership functions."""
    def __init__(self, num_vars, partitions, vmin=-3.0, vmax=3.0):
        self.num_vars = num_vars
        self.partitions = partitions
        self.min = float(vmin)
        self.max = float(vmax)


# --------------------------- Pallas kernel 1: fuzzify ------------------------
def make_fuzzify(num_vars, partitions, vmin, vmax):
    width = (vmax - vmin) / (partitions - 1)
    inv_width = 1.0 / width
    pmax = float(partitions - 1)
    # bf16 stores small integers exactly up to 256; otherwise keep f32.
    out_dtype = jnp.bfloat16 if num_vars * partitions <= 256 else jnp.float32
    out_bytes = 2 if out_dtype == jnp.bfloat16 else 4

    def fuzzify_kernel(x_ref, o_ref):
        tr, ts = o_ref.shape
        # Per-variable offset from the global row index (rows are b*V + v).
        row0 = pl.program_id(0) * tr
        rows = jax.lax.broadcasted_iota(jnp.int32, (tr, ts), 0) + row0
        var_off = ((rows % num_vars) * partitions).astype(jnp.float32)
        x = x_ref[...].astype(jnp.float32)                 # upcast in-register
        # Closed-form nearest-center quantization; ties at exact midpoints go to
        # the LOWER index (matches the strict `mu > best_mu` argmax of the loop).
        t = (x - vmin) * inv_width
        near = jnp.clip(jnp.ceil(t - 0.5), 0.0, pmax)
        mu = 1.0 - jnp.abs(t - near)                       # triangular membership
        idx = jnp.where(mu > 0.0, near, 0.0)               # outside support -> set 0
        o_ref[...] = (idx + var_off).astype(o_ref.dtype)

    def fuzzify(x):
        b, v, s = x.shape
        rows = b * v
        # Lane (time) tile first, then size the row tile to target ~1 MiB blocks.
        tile_s, s_pad = _pick_tile(s, 128, 1024, 512)
        row_cap = max(256, ((256 * 1024) // tile_s) // 16 * 16)
        tile_r, r_pad = _pick_tile(rows, 16, row_cap, 64)

        x2d = jnp.reshape(x, (rows, s))                    # free, contiguous view
        if (r_pad, s_pad) != (rows, s):
            x2d = jnp.pad(x2d, ((0, r_pad - rows), (0, s_pad - s)))

        grid = (r_pad // tile_r, s_pad // tile_s)
        out = pl.pallas_call(
            fuzzify_kernel,
            grid=grid,
            in_specs=[pl.BlockSpec((tile_r, tile_s), lambda ri, si: (ri, si))],
            out_specs=pl.BlockSpec((tile_r, tile_s), lambda ri, si: (ri, si)),
            out_shape=jax.ShapeDtypeStruct((r_pad, s_pad), out_dtype),
            compiler_params=pltpu.CompilerParams(
                dimension_semantics=("parallel", "parallel"),
                vmem_limit_bytes=32 * 1024 * 1024),
            cost_estimate=pl.CostEstimate(
                flops=10 * r_pad * s_pad,
                transcendentals=0,
                bytes_accessed=r_pad * s_pad * (int(x.dtype.itemsize) + out_bytes)),
        )(x2d)
        return jnp.reshape(out[:rows, :s], (b, v, s))      # free reshape back

    return fuzzify


# ----------------- Pallas kernel 2a: embedding via one-hot MXU ---------------
def make_embed_onehot(vocab_cap, embed_dim):
    v_pad = _round_up(vocab_cap, 128)       # MXU-friendly K
    e_pad = _round_up(embed_dim, 128)       # lane-dense output (no masked vst)

    def embed_kernel(ids_ref, table_ref, o_ref):
        ids = ids_ref[...]                                 # (TN, 1) int32
        tn = ids.shape[0]
        col = jax.lax.broadcasted_iota(jnp.int32, (tn, v_pad), 1)
        onehot = (col == ids).astype(jnp.float32)          # exact 0/1
        o_ref[...] = jnp.dot(onehot, table_ref[...],
                             preferred_element_type=jnp.float32)

    def embed(ids, table):
        n = int(ids.shape[0])
        if n <= 256:
            tn = _round_up(max(n, 8), 8)
            n_pad = tn
        else:
            tn = 256
            n_pad = _round_up(n, 256)

        ids2d = jnp.zeros((n_pad, 1), jnp.int32).at[:n, 0].set(ids.astype(jnp.int32))
        table_p = jnp.pad(table.astype(jnp.float32),
                          ((0, v_pad - table.shape[0]), (0, e_pad - table.shape[1])))

        # Constant index_map -> table stays VMEM-resident across grid steps.
        # Once the table is big enough to matter, drop the useless double buffer
        # (v7x has only 64 MiB VMEM/TC and megacore keeps a copy per core).
        table_kwargs = {}
        if v_pad * e_pad * 4 > 2 * 1024 * 1024:
            table_kwargs["pipeline_mode"] = pl.Buffered(1)
        table_spec = pl.BlockSpec((v_pad, e_pad), lambda i: (0, 0), **table_kwargs)

        out = pl.pallas_call(
            embed_kernel,
            grid=(n_pad // tn,),
            in_specs=[pl.BlockSpec((tn, 1), lambda i: (i, 0)), table_spec],
            out_specs=pl.BlockSpec((tn, e_pad), lambda i: (i, 0)),
            out_shape=jax.ShapeDtypeStruct((n_pad, e_pad), jnp.float32),
            compiler_params=pltpu.CompilerParams(
                dimension_semantics=("parallel",),
                vmem_limit_bytes=32 * 1024 * 1024),
            cost_estimate=pl.CostEstimate(
                flops=2 * n_pad * v_pad * e_pad,
                transcendentals=0,
                bytes_accessed=4 * (n_pad + v_pad * e_pad + n_pad * e_pad)),
        )(ids2d, table_p)
        return out[:n, :embed_dim]

    return embed


# ------------- Pallas kernel 2b: embedding via DMA row gather ----------------
def make_embed_gather(vocab_cap, embed_dim, rows_per_step=8):
    """Scalar-prefetch row gather: ids live in SMEM, the table stays in HBM
    (memory_space=ANY), and each grid step DMAs `rows_per_step` rows straight
    into a VMEM scratch. O(N*E) bytes, zero resident-table VMEM, no wasted MXU."""
    e_pad = _round_up(embed_dim, 128)
    rpt = rows_per_step

    def gather_kernel(ids_ref, table_ref, o_ref, buf, sems):
        i = pl.program_id(0)
        for j in range(rpt):                               # static unroll
            row = ids_ref[i * rpt + j]
            pltpu.make_async_copy(table_ref.at[row], buf.at[j], sems.at[j]).start()
        for j in range(rpt):
            pltpu.make_async_copy(table_ref.at[0], buf.at[j], sems.at[j]).wait()
        o_ref[...] = buf[...]
        # TODO(synk): double-buffer across grid steps (prefetch step i+1's rows)
        #             if the per-step DMA latency ever shows up at large N.

    def embed(ids, table):
        n = int(ids.shape[0])
        n_pad = _round_up(max(n, rpt), rpt)
        ids_p = jnp.zeros((n_pad,), jnp.int32).at[:n].set(ids.astype(jnp.int32))
        table_p = table.astype(jnp.float32)
        if e_pad != table.shape[1]:
            table_p = jnp.pad(table_p, ((0, 0), (0, e_pad - table.shape[1])))

        out = pl.pallas_call(
            gather_kernel,
            grid_spec=pltpu.PrefetchScalarGridSpec(
                num_scalar_prefetch=1,
                grid=(n_pad // rpt,),
                in_specs=[pl.BlockSpec(memory_space=pl.ANY)],     # table in HBM
                out_specs=pl.BlockSpec((rpt, e_pad), lambda i, ids: (i, 0)),
                scratch_shapes=[pltpu.VMEM((rpt, e_pad), jnp.float32),
                                pltpu.SemaphoreType.DMA((rpt,))]),
            out_shape=jax.ShapeDtypeStruct((n_pad, e_pad), jnp.float32),
            compiler_params=pltpu.CompilerParams(
                dimension_semantics=("arbitrary",)),
        )(ids_p, table_p)
        return out[:n, :embed_dim]

    return embed


def make_embed(vocab_cap, embed_dim):
    if vocab_cap <= GATHER_VOCAB_THRESHOLD:
        return make_embed_onehot(vocab_cap, embed_dim)
    return make_embed_gather(vocab_cap, embed_dim)


# -------------------------------- Tokenizer ----------------------------------
class Tokenizer:
    def __init__(self, partitioner, embed_dim, window_size, step_size, key):
        self.partitioner = partitioner
        self.window_size = window_size
        self.step_size = step_size
        self.embed_dim = embed_dim
        self.vocab = {}
        self.vocab_size = 1
        self.training = True                               # nn.Module default
        self.vocab_cap = partitioner.num_vars * partitioner.partitions * window_size
        # deterministic ~N(0,1) init (nn.Embedding default)
        self.embedding = jax.random.normal(key, (self.vocab_cap, embed_dim), jnp.float32)
        self._fuzzify = make_fuzzify(partitioner.num_vars, partitioner.partitions,
                                     partitioner.min, partitioner.max)
        self._embed = make_embed(self.vocab_cap, embed_dim)

    def total_tokens(self, samples):
        inc = 0 if (samples - self.window_size) % self.step_size == 0 else 1
        return (samples - self.window_size) // self.step_size + inc

    def sliding_window(self, samples):
        return list(range(0, samples - self.window_size, self.step_size))

    def _hash_windows(self, fuzz_np, starts):
        """Vectorized int64-wraparound rolling hash:
        h = 0; for t in flat: h = (h + t) * P   (mod 2**64)
          == sum_i t_i * P**(L - i)             (mod 2**64)."""
        B, V, _ = fuzz_np.shape
        W = self.window_size
        L = V * W
        T = len(starts)
        pw = np.array([pow(BIG_PRIME, L - i, 1 << 64) for i in range(L)],
                      dtype=np.uint64)
        starts_a = np.asarray(starts, dtype=np.int64).reshape(T, 1)
        idx = starts_a + np.arange(W, dtype=np.int64)[None, :]          # (T, W)
        wins = fuzz_np[:, :, idx]                                       # (B, V, T, W)
        wins = np.transpose(wins, (0, 2, 1, 3)).reshape(B, T, L)        # flatten (V, W)
        wins_u = wins.astype(np.int64).astype(np.uint64)                # trunc like .to(int64)
        h = (wins_u * pw[None, None, :]).sum(axis=-1, dtype=np.uint64)  # wraps mod 2**64
        return h.view(np.int64)                                         # signed reinterpret

    def forward(self, x):
        batch, _, samples = x.shape
        if samples < self.window_size:
            raise Exception('There are less samples than the window_size')
        num_tokens = self.total_tokens(samples)
        starts = self.sliding_window(samples)

        # Fuzzification is elementwise: fuzzify the whole series once on-device
        # (bf16 writeback/D2H when exact) and hash the overlapping windows on
        # host (vocab dict is stateful).
        fuzz_np = np.asarray(self._fuzzify(x)).astype(np.float32)   # (B, V, S)
        hashes = self._hash_windows(fuzz_np, starts)                # (B, T) int64

        ids = np.zeros((batch, num_tokens), dtype=np.int32)
        for ix in range(len(starts)):                      # same order as reference
            for b in range(batch):
                token = int(hashes[b, ix])
                if self.training:
                    if token in self.vocab:
                        num_token = self.vocab[token]
                    else:
                        self.vocab[token] = self.vocab_size
                        num_token = self.vocab_size
                        self.vocab_size += 1
                else:
                    num_token = self.vocab.get(token, 0)
                if num_token >= self.vocab_cap:
                    raise IndexError(
                        f"token id {num_token} exceeds embedding table size "
                        f"{self.vocab_cap} (nn.Embedding would raise)")
                ids[b, ix] = num_token

        flat_ids = jnp.asarray(ids.reshape(-1))
        emb = self._embed(flat_ids, self.embedding)        # (B*T, E)
        return emb.reshape(batch, num_tokens, self.embed_dim)


# ------------------------------ numpy references ------------------------------
def _fuzzify_ref(x_np, num_vars, partitions, vmin, vmax):
    width = (vmax - vmin) / (partitions - 1)
    best_mu = np.full(x_np.shape, -1.0, np.float32)
    best = np.zeros(x_np.shape, np.float32)
    for p in range(partitions):
        c = vmin + p * width
        mu = np.maximum(0.0, 1.0 - np.abs(x_np - c) * (1.0 / width)).astype(np.float32)
        upd = mu > best_mu
        best = np.where(upd, np.float32(p), best)
        best_mu = np.where(upd, mu, best_mu)
    var = np.arange(num_vars, dtype=np.float32).reshape(1, num_vars, 1)
    return var * np.float32(partitions) + best


if __name__ == "__main__":
    key = jax.random.PRNGKey(0)
    k_x, k_emb = jax.random.split(key)

    batch, num_vars, samples = 2, 4, 16
    window_size, step_size, embed_dim, partitions = 8, 4, 32, 7

    x = jax.random.normal(k_x, (batch, num_vars, samples), jnp.float32)
    part = GridPartitioner(num_vars, partitions, vmin=-3.0, vmax=3.0)
    tok = Tokenizer(part, embed_dim, window_size, step_size, key=k_emb)

    out = tok.forward(x)
    out = jax.block_until_ready(out)
    assert out.shape == (batch, tok.total_tokens(samples), embed_dim), out.shape
    assert bool(jnp.all(jnp.isfinite(out)))

    # sanity 1: closed-form quantization matches the explicit argmax reference
    fuzz_dev = np.asarray(jax.block_until_ready(tok._fuzzify(x))).astype(np.float32)
    fuzz_ref = _fuzzify_ref(np.asarray(x, dtype=np.float32),
                            num_vars, partitions, part.min, part.max)
    mismatch = np.mean(fuzz_dev != fuzz_ref)
    assert mismatch < 1e-2, f"fuzzify mismatch fraction {mismatch}"

    # sanity 2: one-hot embed kernel == direct table-row gather
    test_ids = jnp.array([0, 1, 5, 3], dtype=jnp.int32)
    got_rows = jax.block_until_ready(tok._embed(test_ids, tok.embedding))
    ref_rows = tok.embedding[np.asarray(test_ids)]
    assert bool(jnp.allclose(got_rows, ref_rows, atol=0, rtol=0))

    # sanity 3: DMA row-gather path (used automatically at large vocab) also
    # compiles and matches the table rows exactly.
    emb_gather = make_embed_gather(tok.vocab_cap, embed_dim)
    got_rows_g = jax.block_until_ready(emb_gather(test_ids, tok.embedding))
    assert bool(jnp.allclose(got_rows_g, ref_rows, atol=0, rtol=0))

    print("KERNEL_OK")
</pallas_src>

<mosaic_0001>
module attributes {stable_mosaic.version = 11 : i64} {
  func.func @fuzzify_kernel(%arg0: i32, %arg1: i32, %arg2: memref<16x128xf32, #tpu.memory_space<vmem>>, %arg3: memref<16x128xbf16, #tpu.memory_space<vmem>>) attributes {dimension_semantics = [#tpu.dimension_semantics<parallel>, #tpu.dimension_semantics<parallel>], iteration_bounds = array<i64: 1, 1>, scalar_prefetch = 0 : i64, scratch_operands = 0 : i64, tpu.core_type = #tpu.core_type<tc>, window_params = [{transform_indices = @transform_0, window_bounds = array<i64: 16, 128>}, {transform_indices = @transform_1, window_bounds = array<i64: 16, 128>}]} {
    %c16_i32 = arith.constant 16 : i32
    %0 = arith.muli %arg0, %c16_i32 : i32
    %1 = tpu.iota {dimensions = array<i32: 0>} : vector<16x128xi32>
    %2 = vector.broadcast %0 : i32 to vector<16x128xi32>
    %3 = arith.addi %1, %2 : vector<16x128xi32>
    %c4_i32 = arith.constant 4 : i32
    %c0_i32 = arith.constant 0 : i32
    %4 = arith.cmpi eq, %c4_i32, %c0_i32 : i32
    %c1_i32 = arith.constant 1 : i32
    %5 = arith.select %4, %c1_i32, %c4_i32 : i32
    %6 = vector.broadcast %5 : i32 to vector<16x128xi32>
    %7 = arith.remsi %3, %6 : vector<16x128xi32>
    %c0_i32_0 = arith.constant 0 : i32
    %8 = vector.broadcast %c0_i32_0 : i32 to vector<16x128xi32>
    %9 = arith.cmpi ne, %7, %8 : vector<16x128xi32>
    %c0_i32_1 = arith.constant 0 : i32
    %10 = vector.broadcast %c0_i32_1 : i32 to vector<16x128xi32>
    %11 = arith.cmpi slt, %7, %10 : vector<16x128xi32>
    %c0_i32_2 = arith.constant 0 : i32
    %12 = arith.cmpi slt, %5, %c0_i32_2 : i32
    %13 = vector.broadcast %12 : i1 to vector<16x128xi1>
    %14 = vector.broadcast %13 : vector<16x128xi1> to vector<16x128xi1>
    %15 = arith.xori %11, %14 : vector<16x128xi1>
    %16 = arith.andi %15, %9 : vector<16x128xi1>
    %17 = vector.broadcast %5 : i32 to vector<16x128xi32>
    %18 = arith.addi %7, %17 : vector<16x128xi32>
    %19 = arith.select %16, %18, %7 : vector<16x128xi1>, vector<16x128xi32>
    %c7_i32 = arith.constant 7 : i32
    %20 = vector.broadcast %c7_i32 : i32 to vector<16x128xi32>
    %21 = arith.muli %19, %20 : vector<16x128xi32>
    %22 = arith.sitofp %21 : vector<16x128xi32> to vector<16x128xf32>
    %c0 = arith.constant 0 : index
    %c0_3 = arith.constant 0 : index
    %23 = vector.load %arg2[%c0, %c0_3] : memref<16x128xf32, #tpu.memory_space<vmem>>, vector<16x128xf32>
    %cst = arith.constant -3.000000e+00 : f32
    %24 = vector.broadcast %cst : f32 to vector<16x128xf32>
    %25 = arith.subf %23, %24 : vector<16x128xf32>
    %cst_4 = arith.constant 1.000000e+00 : f32
    %26 = vector.broadcast %cst_4 : f32 to vector<16x128xf32>
    %27 = arith.mulf %25, %26 : vector<16x128xf32>
    %cst_5 = arith.constant 5.000000e-01 : f32
    %28 = vector.broadcast %cst_5 : f32 to vector<16x128xf32>
    %29 = arith.subf %27, %28 : vector<16x128xf32>
    %30 = math.ceil %29 : vector<16x128xf32>
    %cst_6 = arith.constant 0.000000e+00 : f32
    %cst_7 = arith.constant 6.000000e+00 : f32
    %31 = vector.broadcast %cst_6 : f32 to vector<16x128xf32>
    %32 = arith.maximumf %31, %30 : vector<16x128xf32>
    %33 = vector.broadcast %cst_7 : f32 to vector<16x128xf32>
    %34 = arith.minimumf %33, %32 : vector<16x128xf32>
    %35 = arith.subf %27, %34 : vector<16x128xf32>
    %36 = math.absf %35 : vector<16x128xf32>
    %cst_8 = arith.constant 1.000000e+00 : f32
    %37 = vector.broadcast %cst_8 : f32 to vector<16x128xf32>
    %38 = arith.subf %37, %36 : vector<16x128xf32>
    %cst_9 = arith.constant 0.000000e+00 : f32
    %39 = vector.broadcast %cst_9 : f32 to vector<16x128xf32>
    %40 = arith.cmpf ogt, %38, %39 : vector<16x128xf32>
    %cst_10 = arith.constant 0.000000e+00 : f32
    %41 = vector.broadcast %cst_10 : f32 to vector<16x128xf32>
    %42 = arith.select %40, %34, %41 : vector<16x128xi1>, vector<16x128xf32>
    %43 = arith.addf %42, %22 : vector<16x128xf32>
    %44 = arith.truncf %43 : vector<16x128xf32> to vector<16x128xbf16>
    %c0_11 = arith.constant 0 : index
    %c0_12 = arith.constant 0 : index
    %45 = vector.load %arg3[%c0_11, %c0_12] : memref<16x128xbf16, #tpu.memory_space<vmem>>, vector<16x128xbf16>
    tpu.vector_store %arg3[%c0_11, %c0_12], %44 {strides = array<i32>} : memref<16x128xbf16, #tpu.memory_space<vmem>>, vector<16x128xbf16>,
    return
  }
  func.func @transform_0(%arg0: i32, %arg1: i32) -> (i32, i32) {
    %c0_i32 = arith.constant 0 : i32
    return %arg0, %arg1 : i32, i32
  }
  func.func @transform_1(%arg0: i32, %arg1: i32) -> (i32, i32) {
    %c0_i32 = arith.constant 0 : i32
    return %arg0, %arg1 : i32, i32
  }
}

</mosaic_0001>

<bundles_post_ra>
// kernel: tpu_custom_call.1
= control target key start
LH: loop header
LB: loop body
LE: loop exit
PB: predicated region body
PF: predicated region fallthrough
CT: control target
= control target key end

     0   :  { %6 = vsyncpa [#allocation3], 0  ;;  %s196_s0 = inlined_call_operand.hbm [shape: f32[16,128], index: 0, kind: input, shape index: {}]   ;;  %s197_s1 = inlined_call_operand.hbm [shape: bf16[16,128], index: 1, kind: output, shape index: {}]  }
   0x1   :  { %7 = vsyncpa [#allocation4], 0  ;;  %s12_s8 = sshll.u32 %s196_s0, 4  ;;  %s174_s9 = smov [#allocation2]   ;;  %s13_s8 = int_to_ptr.hbm [resolvable:$true] %s12_s8 }
   0x2   :  { %s14_s10 = sshll.u32 %s174_s9, 4  ;;  %s175_s11 = smov 128   ;;  %s15_s10 = int_to_ptr.vmem [resolvable:$true] %s14_s10 }
   0x3   :  { %s176_s12 = smov 8  }
   0x4   :  { %20 = dma.hbm_to_vmem [thread:$0]  %s13_s8, 256, %s15_s10, [#allocation3], %s175_s11, %s175_s11, %s176_s12  }
   0x5   :  { %170 = dma.done.wait [#allocation3], 256  }
   0x6   :  { %171 = vsyncadd [#allocation3], 4294967040  ;;  %v26_v0 = vlaneseq  ;;  %v60_v2 = vld [vmem:[#allocation2] sm:$0xff]  ;;  %v61_v3 = vld [vmem:[#allocation2 + $0x8] sm:$0xff]  ;;  %s177_s0 = smov [#allocation5]   ;;  %s94_s16 = sshll.u32 %s197_s1, 4  ;;  %s95_s16 = int_to_ptr.hbm [resolvable:$true] %s94_s16 }
   0x7   :  { %v107_v4 = vadd.f32 3.0, %v60_v2  ;;  %v108_v5 = vadd.f32 3.0, %v61_v3  ;;  %s92_s13 = sshll.u32 %s177_s0, 4  ;;  %s178_s17 = smov 64   ;;  %s93_s13 = int_to_ptr.vmem [resolvable:$true] %s92_s13 }
   0x8   :  { %v27_v1 = vshrl.u32 %v26_v0, 7  ;;  %s179_s18 = smov 4  }
   0x9   :  { %v109_v7 = vadd.f32 -0.5, %v107_v4  ;;  %v110_v8 = vadd.f32 -0.5, %v108_v5 }
   0xa   :  { %v28_v6 = vadd.s32 8, %v27_v1  ;;  %v36_v11 = vand.u32 3, %v27_v1 }
   0xb   :  { %v66_v9 = vceil.f32 %v109_v7  ;;  %v67_v10 = vceil.f32 %v110_v8 }
   0xc   :  { %v43_v12 = vand.u32 3, %v28_v6  ;;  %v56_v17 = vmul.u32 7, %v36_v11 }
   0xd   :  { %v68_v13 = vmax.f32 %v66_v9, 0.0  ;;  %v69_v14 = vmax.f32 %v67_v10, 0.0 }
   0xe   :  { %v57_v18 = vmul.u32 7, %v43_v12  ;;  %v58_v23 = vcvt.s32.f32 %v56_v17 }
   0xf   :  { %v70_v15 = vmin.f32 %v68_v13, 6.0  ;;  %v71_v16 = vmin.f32 %v69_v14, 6.0 }
  0x10   :  { %v59_v24 = vcvt.s32.f32 %v57_v18 }
  0x11   :  { %v72_v19 = vsub.f32 %v107_v4, %v70_v15  ;;  %v73_v20 = vsub.f32 %v108_v5, %v71_v16 }
  0x13   :  { %v74_v21 = vand.u32 2147483647, %v72_v19  ;;  %v75_v22 = vand.u32 2147483647, %v73_v20 }
  0x15   :  { %v76_v25 = vsub.f32 1.0, %v74_v21  ;;  %v77_v26 = vsub.f32 1.0, %v75_v22 }
  0x17   :  { %vm78_vm0 = vcmp.gt.f32.partialorder %v76_v25, 0.0  ;;  %vm79_vm1 = vcmp.gt.f32.partialorder %v77_v26, 0.0 }
  0x18   :  { %v80_v27 = vsel %vm78_vm0, %v70_v15, 0.0  ;;  %v81_v28 = vsel %vm79_vm1, %v71_v16, 0.0 }
  0x19   :  { %v82_v29 = vadd.f32 %v80_v27, %v58_v23  ;;  %v83_v30 = vadd.f32 %v81_v28, %v59_v24 }
  0x1b   :  { %v114_v31 = vpack.c.bf16 %v83_v30, %v82_v29 }
  0x1d   :  { %115 = vst [vmem:[#allocation5] sm:$0xff] %v114_v31  }
  0x1e   :  { %100 = dma.vmem_to_hbm [thread:$0]  %s93_s13, 128, %s95_s16, [#allocation4], %s178_s17, %s178_s17, %s179_s18  }
  0x1f   :  { %172 = dma.done.wait [#allocation4], 128  }
  0x20   :  { %173 = vsyncadd [#allocation4], 4294967168 }
  0x21   :  { %105 = vsyncpa [#allocation3], 1 }
  0x22   :  { %106 = vsyncpa [#allocation4], 1 }

</bundles_post_ra>
